<compile_context>
chip_gen: v7x
topology: tpu7x:2x2x1
jax: 0.10.0
libtpu: 0.0.40
codegen_flags: <defaults>
</compile_context>

<pallas_src>
import jax
import jax.numpy as jnp
from jax import lax
from jax.experimental import pallas as pl
from jax.experimental.pallas import tpu as pltpu

LANES = 128                    # vreg lane width
SUBLANES = 8                   # f32 sublanes per vreg
_ALIGN = LANES * SUBLANES      # 1024 elems -> slab row count is always 8-aligned
TILE_ROWS_MAX = 8192           # 8192 x 128 f32 = 4 MiB per operand tile


def fused_affine_kernel(m_ref, b_ref, x_ref, o_ref):
    # x_ref: (TR, 128) slab tile; lanes interleave (x0, x1) pairs of the batch.
    # m_ref: (128, 128) block-diagonal fused weight (constant across grid).
    # b_ref: (1, 128) lane bias (b0, b1, b0, b1, ...).
    # One MXU matmul applies the fused 2x2 affine map to every lane pair;
    # HIGHEST precision keeps full f32 accuracy on the MXU.
    o_ref[...] = (
        jnp.dot(
            x_ref[...],
            m_ref[...],
            preferred_element_type=jnp.float32,
            precision=lax.Precision.HIGHEST,
        )
        + b_ref[...]
    )


def _round_up(n, m):
    return ((n + m - 1) // m) * m


@jax.jit
def mlp_forward(x, w1, b1, w2, b2):
    """Forward of dense2(dense1(x)) with PyTorch-style params:
       x: (B, 2), w1: (4, 2), b1: (4,), w2: (2, 4), b2: (2,)."""
    in_f = w1.shape[1]    # 2
    out_f = w2.shape[0]   # 2
    assert in_f == out_f and LANES % in_f == 0
    B = x.shape[0]
    out_dtype = x.dtype

    # --- tiny fused-parameter prep (all <= 128x128, negligible) --------------
    w_eff = (w2 @ w1).astype(jnp.float32)            # (2, 2)
    b_eff = (b1 @ w2.T + b2).astype(jnp.float32)     # (2,)
    pairs = LANES // in_f                            # 64 (x0, x1) pairs per row
    m_lane = jnp.kron(jnp.eye(pairs, dtype=jnp.float32), w_eff.T)  # (128, 128)
    bias_lane = jnp.tile(b_eff, pairs).reshape(1, LANES)           # (1, 128)

    # --- lane-dense slab: free row-major reshape, no transpose ---------------
    elems = B * in_f
    padded = _round_up(max(elems, 1), _ALIGN)
    x_flat = x.reshape(-1).astype(jnp.float32)
    if padded != elems:                   # tiny flat pad only when unaligned
        x_flat = jnp.pad(x_flat, (0, padded - elems))
    rows = padded // LANES                # always a multiple of 8
    x_slab = x_flat.reshape(rows, LANES)

    # --- batch tiling: multi-MiB tiles, >=2 grid steps when possible ---------
    if rows <= SUBLANES:
        tile_rows = rows                                       # single small tile
    else:
        tile_rows = min(TILE_ROWS_MAX, _round_up(rows // 2, SUBLANES))
    grid = pl.cdiv(rows, tile_rows)       # ragged last block handled by Pallas

    out_slab = pl.pallas_call(
        fused_affine_kernel,
        out_shape=jax.ShapeDtypeStruct((rows, LANES), jnp.float32),
        grid_spec=pltpu.PrefetchScalarGridSpec(
            num_scalar_prefetch=0,
            grid=(grid,),
            in_specs=[
                pl.BlockSpec((LANES, LANES), lambda i: (0, 0)),      # fused W
                pl.BlockSpec((1, LANES), lambda i: (0, 0)),          # fused bias
                pl.BlockSpec((tile_rows, LANES), lambda i: (i, 0)),  # x slab tile
            ],
            out_specs=pl.BlockSpec((tile_rows, LANES), lambda i: (i, 0)),
        ),
        compiler_params=pltpu.CompilerParams(
            dimension_semantics=("parallel",),     # shard batch tiles across TCs
            vmem_limit_bytes=32 * 1024 * 1024,     # headroom for 4 MiB tiles on v5e
        ),
    )(m_lane, bias_lane, x_slab)

    # Back to the caller's (B, 2) layout: free reshape; slice only drops the
    # small alignment pad (never fed into any reduction).
    out = out_slab.reshape(-1)[: B * out_f].reshape(B, out_f)
    return out.astype(out_dtype)


def init_params(key):
    # Deterministic init mimicking nn.Linear default: U(-1/sqrt(fan_in), +1/sqrt(fan_in))
    k1, k2, k3, k4 = jax.random.split(key, 4)
    bound1 = 1.0 / jnp.sqrt(2.0)
    bound2 = 1.0 / jnp.sqrt(4.0)
    w1 = jax.random.uniform(k1, (4, 2), jnp.float32, -bound1, bound1)
    b1 = jax.random.uniform(k2, (4,), jnp.float32, -bound1, bound1)
    w2 = jax.random.uniform(k3, (2, 4), jnp.float32, -bound2, bound2)
    b2 = jax.random.uniform(k4, (2,), jnp.float32, -bound2, bound2)
    return w1, b1, w2, b2


if __name__ == "__main__":
    key = jax.random.PRNGKey(0)
    k_x, k_p = jax.random.split(key)
    w1, b1, w2, b2 = init_params(k_p)

    # Small shape implied by the module (Linear(2,4) -> Linear(4,2)).
    B = 8
    x = jax.random.normal(k_x, (B, 2), jnp.float32)
    out = jax.block_until_ready(mlp_forward(x, w1, b1, w2, b2))
    ref = (x @ w1.T + b1) @ w2.T + b2
    assert out.shape == (B, 2)
    assert jnp.allclose(out, ref, atol=1e-4, rtol=1e-4)

    # Also exercise the padded / multi-tile grid path once.
    B2 = 1000
    x2 = jax.random.normal(k_x, (B2, 2), jnp.float32)
    out2 = jax.block_until_ready(mlp_forward(x2, w1, b1, w2, b2))
    ref2 = (x2 @ w1.T + b1) @ w2.T + b2
    assert out2.shape == (B2, 2)
    assert jnp.allclose(out2, ref2, atol=1e-4, rtol=1e-4)

    print("KERNEL_OK")
</pallas_src>

<mosaic_0001>
module attributes {stable_mosaic.version = 11 : i64} {
  func.func @fused_affine_kernel(%arg0: i32, %arg1: memref<128x128xf32, #tpu.memory_space<vmem>>, %arg2: memref<1x128xf32, #tpu.memory_space<vmem>>, %arg3: memref<8x128xf32, #tpu.memory_space<vmem>>, %arg4: memref<8x128xf32, #tpu.memory_space<vmem>>) attributes {dimension_semantics = [#tpu.dimension_semantics<parallel>], iteration_bounds = array<i64: 1>, scalar_prefetch = 0 : i64, scratch_operands = 0 : i64, tpu.core_type = #tpu.core_type<tc>, window_params = [{pipeline_mode = #tpu.pipeline_mode<synchronous>, transform_indices = @transform_0, window_bounds = array<i64: 128, 128>}, {pipeline_mode = #tpu.pipeline_mode<synchronous>, transform_indices = @transform_1, window_bounds = array<i64: 1, 128>}, {transform_indices = @transform_2, window_bounds = array<i64: 8, 128>}, {transform_indices = @transform_3, window_bounds = array<i64: 8, 128>}]} {
    %c0 = arith.constant 0 : index
    %c0_0 = arith.constant 0 : index
    %0 = vector.load %arg3[%c0, %c0_0] : memref<8x128xf32, #tpu.memory_space<vmem>>, vector<8x128xf32>
    %c0_1 = arith.constant 0 : index
    %c0_2 = arith.constant 0 : index
    %1 = vector.load %arg1[%c0_1, %c0_2] : memref<128x128xf32, #tpu.memory_space<vmem>>, vector<128x128xf32>
    %cst = arith.constant dense<0.000000e+00> : vector<8x128xf32>
    %2 = tpu.matmul %0, %1, %cst {dimension_numbers = #tpu.dot_dimension_numbers<[1], [0], [0], [1], [0, 0, 1, 1], [], []>, precision = #tpu.contract_precision<fp32>} : vector<8x128xf32>, vector<128x128xf32>, vector<8x128xf32> -> vector<8x128xf32>
    %c0_3 = arith.constant 0 : index
    %c0_4 = arith.constant 0 : index
    %3 = vector.load %arg2[%c0_3, %c0_4] : memref<1x128xf32, #tpu.memory_space<vmem>>, vector<1x128xf32>
    %4 = vector.broadcast %3 : vector<1x128xf32> to vector<8x128xf32>
    %5 = arith.addf %2, %4 : vector<8x128xf32>
    %c0_5 = arith.constant 0 : index
    %c0_6 = arith.constant 0 : index
    %6 = vector.load %arg4[%c0_5, %c0_6] : memref<8x128xf32, #tpu.memory_space<vmem>>, vector<8x128xf32>
    tpu.vector_store %arg4[%c0_5, %c0_6], %5 {strides = array<i32>} : memref<8x128xf32, #tpu.memory_space<vmem>>, vector<8x128xf32>,
    return
  }
  func.func @transform_0(%arg0: i32) -> (i32, i32) {
    %c0_i32 = arith.constant 0 : i32
    %c0_i32_0 = arith.constant 0 : i32
    %c0_i32_1 = arith.constant 0 : i32
    return %c0_i32, %c0_i32_0 : i32, i32
  }
  func.func @transform_1(%arg0: i32) -> (i32, i32) {
    %c0_i32 = arith.constant 0 : i32
    %c0_i32_0 = arith.constant 0 : i32
    %c0_i32_1 = arith.constant 0 : i32
    return %c0_i32, %c0_i32_0 : i32, i32
  }
  func.func @transform_2(%arg0: i32) -> (i32, i32) {
    %c0_i32 = arith.constant 0 : i32
    %c0_i32_0 = arith.constant 0 : i32
    return %arg0, %c0_i32 : i32, i32
  }
  func.func @transform_3(%arg0: i32) -> (i32, i32) {
    %c0_i32 = arith.constant 0 : i32
    %c0_i32_0 = arith.constant 0 : i32
    return %arg0, %c0_i32 : i32, i32
  }
}

</mosaic_0001>

<bundles_post_ra>
// kernel: tile.8
= control target key start
LH: loop header
LB: loop body
LE: loop exit
PB: predicated region body
PF: predicated region fallthrough
CT: control target
= control target key end

     0   :  { %s64_s0 = inlined_call_operand.vmem [shape: f32[2], index: 0, kind: input, shape index: {}]   ;;  %s65_s1 = inlined_call_operand.vmem [shape: f32[64,2], index: 1, kind: output, shape index: {}]  }
   0x1   :  { %v4_v0 = vld [vmem:[%s64_s0] ss:$0 sm:$0xff] }
   0x2   :  { %5 = vst [vmem:[%s65_s1] sm:$0xff] %v4_v0  ;;  %20 = vst [vmem:[%s65_s1 + $0x8] sm:$0xff] %v4_v0 }
   0x3   :  { %21 = vst [vmem:[%s65_s1 + $0x10] sm:$0xff] %v4_v0  ;;  %22 = vst [vmem:[%s65_s1 + $0x18] sm:$0xff] %v4_v0 }
   0x4   :  { %23 = vst [vmem:[%s65_s1 + $0x20] sm:$0xff] %v4_v0  ;;  %24 = vst [vmem:[%s65_s1 + $0x28] sm:$0xff] %v4_v0 }
   0x5   :  { %25 = vst [vmem:[%s65_s1 + $0x30] sm:$0xff] %v4_v0  ;;  %26 = vst [vmem:[%s65_s1 + $0x38] sm:$0xff] %v4_v0 }

// kernel: tile.9
= control target key start
LH: loop header
LB: loop body
LE: loop exit
PB: predicated region body
PF: predicated region fallthrough
CT: control target
= control target key end

     0   :  { %s515_s10 = smov 126   ;;  %s516_s11 = smov 122   ;;  %vm3_vm0 = vcmask 15360   ;;  %vm9_vm1 = vcmask 1048560   ;;  %vm21_vm2 = vcmask 1015760   ;;  %vm15_vm3 = vcmask 1032160   ;;  %s783_s0 = inlined_call_operand.vmem [shape: f32[64,2], index: 0, kind: input, shape index: {}]   ;;  %s784_s1 = inlined_call_operand.vmem [shape: f32[1,128], index: 1, kind: output, shape index: {}]  }
   0x1   :  { %v389_v0 = vld [vmem:[%s783_s0 + $0x3f] sm:$0x1]   ;;  %v391_v1 = vld [vmem:[%s783_s0 + $0x3d] sm:$0x1]   ;;  %v390_v2 = vld [vmem:[%s783_s0 + $0x3e] sm:$0x1]  }
   0x2   :  { %7 = vrot.lane.b32.xlu0 %v389_v0, %s515_s10  ;;  %19 = vrot.lane.b32.xlu1 %v391_v1, %s516_s11  ;;  %v392_v3 = vld [vmem:[%s783_s0 + $0x3c] sm:$0x1]   ;;  %s517_s16 = smov 124   ;;  %s518_s17 = smov 120   ;;  %v393_v4 = vld [vmem:[%s783_s0 + $0x3b] sm:$0x1]  }
   0x3   :  { %v394_v5 = vld [vmem:[%s783_s0 + $0x3a] sm:$0x1]   ;;  %s519_s22 = smov 118   ;;  %s520_s23 = smov 116   ;;  %v395_v6 = vld [vmem:[%s783_s0 + $0x39] sm:$0x1]  }
   0x4   :  { %v396_v7 = vld [vmem:[%s783_s0 + $0x38] sm:$0x1]   ;;  %s521_s28 = smov 114   ;;  %s522_s29 = smov 112   ;;  %v397_v8 = vld [vmem:[%s783_s0 + $0x37] sm:$0x1]  }
   0x5   :  { %v398_v9 = vld [vmem:[%s783_s0 + $0x36] sm:$0x1]   ;;  %s523_s5 = smov 110   ;;  %s524_s6 = smov 108   ;;  %v399_v10 = vld [vmem:[%s783_s0 + $0x35] sm:$0x1]  }
   0x6   :  { %13 = vrot.lane.b32.xlu0 %v390_v2, %s517_s16  ;;  %25 = vrot.lane.b32.xlu1 %v392_v3, %s518_s17  ;;  %v400_v11 = vld [vmem:[%s783_s0 + $0x34] sm:$0x1]   ;;  %s525_s11 = smov 106   ;;  %s526_s12 = smov 104   ;;  %v401_v12 = vld [vmem:[%s783_s0 + $0x33] sm:$0x1]  }
   0x7   :  { %v402_v13 = vld [vmem:[%s783_s0 + $0x32] sm:$0x1]   ;;  %s527_s17 = smov 102   ;;  %s528_s18 = smov 100   ;;  %v403_v14 = vld [vmem:[%s783_s0 + $0x31] sm:$0x1]  }
   0x8   :  { %v404_v15 = vld [vmem:[%s783_s0 + $0x30] sm:$0x1]   ;;  %v2_v16 = vld [vmem:[%s783_s0] sm:$0x1]   ;;  %s529_s25 = smov 98   ;;  %s530_s26 = smov 96  }
   0x9   :  { %v405_v17 = vld [vmem:[%s783_s0 + $0x2f] sm:$0x1]   ;;  %v406_v18 = vld [vmem:[%s783_s0 + $0x2e] sm:$0x1]   ;;  %4 = vst.msk [vmem:[#allocation0] sm:$0x1] %vm3_vm0, %v2_v16  }
   0xa   :  { %31 = vrot.lane.b32.xlu0 %v393_v4, %s519_s22  ;;  %37 = vrot.lane.b32.xlu1 %v394_v5, %s520_s23  ;;  %s531_s2 = smov 94   ;;  %s532_s3 = smov 92   ;;  %v407_v19 = vld [vmem:[%s783_s0 + $0x2d] sm:$0x1]   ;;  %v408_v20 = vld [vmem:[%s783_s0 + $0x2c] sm:$0x1]  }
   0xb   :  { %s533_s8 = smov 90   ;;  %s534_s9 = smov 88   ;;  %v409_v21 = vld [vmem:[%s783_s0 + $0x2b] sm:$0x1]   ;;  %v410_v22 = vld [vmem:[%s783_s0 + $0x2a] sm:$0x1]  }
   0xc   :  { %s535_s14 = smov 86   ;;  %s536_s15 = smov 84   ;;  %v411_v23 = vld [vmem:[%s783_s0 + $0x29] sm:$0x1]   ;;  %v412_v24 = vld [vmem:[%s783_s0 + $0x28] sm:$0x1]  }
   0xd   :  { %s537_s20 = smov 82   ;;  %s538_s21 = smov 80   ;;  %v413_v25 = vld [vmem:[%s783_s0 + $0x27] sm:$0x1]   ;;  %v414_v26 = vld [vmem:[%s783_s0 + $0x26] sm:$0x1]  }
   0xe   :  { %43 = vrot.lane.b32.xlu0 %v395_v6, %s521_s28  ;;  %49 = vrot.lane.b32.xlu1 %v396_v7, %s522_s29  ;;  %s540_s27 = smov 76   ;;  %v415_v27 = vld [vmem:[%s783_s0 + $0x25] sm:$0x1]   ;;  %v416_v28 = vld [vmem:[%s783_s0 + $0x24] sm:$0x1]   ;;  %s542_s4 = smov 72  }
   0xf   :  { %v417_v29 = vld [vmem:[%s783_s0 + $0x23] sm:$0x1]   ;;  %v418_v30 = vld [vmem:[%s783_s0 + $0x22] sm:$0x1]   ;;  %s544_s10 = smov 68   ;;  %s546_s16 = smov 64  }
  0x10   :  { %v419_v31 = vld [vmem:[%s783_s0 + $0x21] sm:$0x1]   ;;  %v420_v32 = vld [vmem:[%s783_s0 + $0x20] sm:$0x1]   ;;  %v421_v33 = vld [vmem:[%s783_s0 + $0x1f] sm:$0x1]  }
  0x11   :  { %v422_v34 = vld [vmem:[%s783_s0 + $0x1e] sm:$0x1]   ;;  %s548_s22 = smov 60   ;;  %v423_v35 = vld [vmem:[%s783_s0 + $0x1d] sm:$0x1]   ;;  %s550_s28 = smov 56  }
  0x12   :  { %55 = vrot.lane.b32.xlu0 %v397_v8, %s523_s5  ;;  %61 = vrot.lane.b32.xlu1 %v398_v9, %s524_s6  ;;  %v424_v36 = vld [vmem:[%s783_s0 + $0x1c] sm:$0x1]   ;;  %v425_v37 = vld [vmem:[%s783_s0 + $0x1b] sm:$0x1]   ;;  %s552_s5 = smov 52   ;;  %s558_s23 = smov 40  }
  0x13   :  { %v426_v38 = vld [vmem:[%s783_s0 + $0x1a] sm:$0x1]   ;;  %v427_v39 = vld [vmem:[%s783_s0 + $0x19] sm:$0x1]   ;;  %v428_v40 = vld [vmem:[%s783_s0 + $0x18] sm:$0x1]  }
  0x14   :  { %v429_v41 = vld [vmem:[%s783_s0 + $0x17] sm:$0x1]   ;;  %v430_v42 = vld [vmem:[%s783_s0 + $0x16] sm:$0x1]   ;;  %v431_v43 = vld [vmem:[%s783_s0 + $0x15] sm:$0x1]  }
  0x15   :  { %v432_v44 = vld [vmem:[%s783_s0 + $0x14] sm:$0x1]   ;;  %v433_v45 = vld [vmem:[%s783_s0 + $0x13] sm:$0x1]   ;;  %v434_v46 = vld [vmem:[%s783_s0 + $0x12] sm:$0x1]  }
  0x16   :  { %67 = vrot.lane.b32.xlu0 %v399_v10, %s525_s11  ;;  %73 = vrot.lane.b32.xlu1 %v400_v11, %s526_s12  ;;  %s554_s11 = smov 48   ;;  %s560_s29 = smov 36   ;;  %v435_v47 = vld [vmem:[%s783_s0 + $0x11] sm:$0x1]   ;;  %v436_v48 = vld [vmem:[%s783_s0 + $0x10] sm:$0x1]  }
  0x17   :  { %s562_s6 = smov 32   ;;  %v437_v49 = vld [vmem:[%s783_s0 + $0xf] sm:$0x1]   ;;  %v438_v50 = vld [vmem:[%s783_s0 + $0xe] sm:$0x1]   ;;  %s564_s12 = smov 28  }
  0x18   :  { %v439_v51 = vld [vmem:[%s783_s0 + $0xd] sm:$0x1]   ;;  %v440_v52 = vld [vmem:[%s783_s0 + $0xc] sm:$0x1]   ;;  %v441_v53 = vld [vmem:[%s783_s0 + $0xb] sm:$0x1]  }
  0x19   :  { %v442_v54 = vld [vmem:[%s783_s0 + $0xa] sm:$0x1]   ;;  %s568_s24 = smov 20   ;;  %v443_v55 = vld [vmem:[%s783_s0 + $0x9] sm:$0x1]   ;;  %s570_s30 = smov 16  }
  0x1a   :  { %79 = vrot.lane.b32.xlu0 %v401_v12, %s527_s17  ;;  %85 = vrot.lane.b32.xlu1 %v402_v13, %s528_s18  ;;  %s556_s17 = smov 44   ;;  %s566_s18 = smov 24   ;;  %v444_v56 = vld [vmem:[%s783_s0 + $0x8] sm:$0x1]   ;;  %v445_v57 = vld [vmem:[%s783_s0 + $0x7] sm:$0x1]  }
  0x1b   :  { %v446_v58 = vld [vmem:[%s783_s0 + $0x6] sm:$0x1]   ;;  %s572_s7 = smov 12   ;;  %v447_v59 = vld [vmem:[%s783_s0 + $0x5] sm:$0x1]   ;;  %s574_s13 = smov 8  }
  0x1c   :  { %v448_v60 = vld [vmem:[%s783_s0 + $0x4] sm:$0x1]   ;;  %v449_v63 = vld [vmem:[%s783_s0 + $0x3] sm:$0x1]   ;;  %v450_v0 = vld [vmem:[%s783_s0 + $0x2] sm:$0x1]  }
  0x1d   :  { %vm27_vm4 = vcmask 999360   ;;  %vm33_vm5 = vcmask 982960   ;;  %s576_s19 = smov 4   ;;  %v451_v3 = vld [vmem:[%s783_s0 + $0x1] sm:$0x1]   ;;  %vm39_vm6 = vcmask 966560  }
  0x1e   :  { %91 = vrot.lane.b32.xlu0 %v403_v14, %s529_s25  ;;  %97 = vrot.lane.b32.xlu1 %v404_v15, %s530_s26  ;;  %s539_s26 = smov 78   ;;  %s577_s0 = smov 2   ;;  %vm45_vm7 = vcmask 950160   ;;  %vm51_vm8 = vcmask 933760   ;;  %vm57_vm9 = vcmask 917360   ;;  %vm63_vm10 = vcmask 900960  }
  0x1f   :  { %vm69_vm11 = vcmask 884560   ;;  %vm75_vm12 = vcmask 868160   ;;  %vm81_vm13 = vcmask 851760   ;;  %vm87_vm14 = vcmask 835360  }
  0x20   :  { %vm93_vm15 = vcmask 818960   ;;  %vm99_vm0 = vcmask 802560  }
  0x22   :  { %103 = vrot.lane.b32.xlu0 %v405_v17, %s531_s2  ;;  %109 = vrot.lane.b32.xlu1 %v406_v18, %s532_s3  ;;  %s541_s3 = smov 74  }
  0x26   :  { %115 = vrot.lane.b32.xlu0 %v407_v19, %s533_s8  ;;  %121 = vrot.lane.b32.xlu1 %v408_v20, %s534_s9  ;;  %s543_s9 = smov 70  }
  0x2a   :  { %127 = vrot.lane.b32.xlu0 %v409_v21, %s535_s14  ;;  %133 = vrot.lane.b32.xlu1 %v410_v22, %s536_s15  ;;  %s545_s15 = smov 66  }
  0x2e   :  { %139 = vrot.lane.b32.xlu0 %v411_v23, %s537_s20  ;;  %145 = vrot.lane.b32.xlu1 %v412_v24, %s538_s21  ;;  %s547_s21 = smov 62  }
  0x32   :  { %151 = vrot.lane.b32.xlu0 %v413_v25, %s539_s26  ;;  %157 = vrot.lane.b32.xlu1 %v414_v26, %s540_s27  ;;  %s549_s27 = smov 58  }
  0x36   :  { %163 = vrot.lane.b32.xlu0 %v415_v27, %s541_s3  ;;  %169 = vrot.lane.b32.xlu1 %v416_v28, %s542_s4  ;;  %s551_s4 = smov 54  }
  0x3a   :  { %175 = vrot.lane.b32.xlu0 %v417_v29, %s543_s9  ;;  %181 = vrot.lane.b32.xlu1 %v418_v30, %s544_s10  ;;  %s553_s10 = smov 50  }
  0x3e   :  { %187 = vrot.lane.b32.xlu0 %v419_v31, %s545_s15  ;;  %193 = vrot.lane.b32.xlu1 %v420_v32, %s546_s16  ;;  %s555_s16 = smov 46  }
  0x42   :  { %199 = vrot.lane.b32.xlu0 %v421_v33, %s547_s21  ;;  %205 = vrot.lane.b32.xlu1 %v422_v34, %s548_s22  ;;  %s557_s22 = smov 42  }
  0x46   :  { %211 = vrot.lane.b32.xlu0 %v423_v35, %s549_s27  ;;  %217 = vrot.lane.b32.xlu1 %v424_v36, %s550_s28  ;;  %s559_s28 = smov 38  }
  0x4a   :  { %223 = vrot.lane.b32.xlu0 %v425_v37, %s551_s4  ;;  %229 = vrot.lane.b32.xlu1 %v426_v38, %s552_s5  ;;  %s561_s5 = smov 34  }
  0x4e   :  { %235 = vrot.lane.b32.xlu0 %v427_v39, %s553_s10  ;;  %241 = vrot.lane.b32.xlu1 %v428_v40, %s554_s11  ;;  %s563_s11 = smov 30  }
  0x52   :  { %247 = vrot.lane.b32.xlu0 %v429_v41, %s555_s16  ;;  %253 = vrot.lane.b32.xlu1 %v430_v42, %s556_s17  ;;  %s565_s17 = smov 26  }
  0x56   :  { %259 = vrot.lane.b32.xlu0 %v431_v43, %s557_s22  ;;  %265 = vrot.lane.b32.xlu1 %v432_v44, %s558_s23  ;;  %s567_s23 = smov 22  }
  0x5a   :  { %271 = vrot.lane.b32.xlu0 %v433_v45, %s559_s28  ;;  %277 = vrot.lane.b32.xlu1 %v434_v46, %s560_s29  ;;  %s569_s29 = smov 18  }
  0x5e   :  { %283 = vrot.lane.b32.xlu0 %v435_v47, %s561_s5  ;;  %289 = vrot.lane.b32.xlu1 %v436_v48, %s562_s6  ;;  %s571_s6 = smov 14  }
  0x62   :  { %295 = vrot.lane.b32.xlu0 %v437_v49, %s563_s11  ;;  %301 = vrot.lane.b32.xlu1 %v438_v50, %s564_s12  ;;  %s573_s12 = smov 10  }
  0x66   :  { %307 = vrot.lane.b32.xlu0 %v439_v51, %s565_s17  ;;  %313 = vrot.lane.b32.xlu1 %v440_v52, %s566_s18  ;;  %s575_s18 = smov 6  }
  0x6a   :  { %319 = vrot.lane.b32.xlu0 %v441_v53, %s567_s23  ;;  %325 = vrot.lane.b32.xlu1 %v442_v54, %s568_s24 }
  0x6e   :  { %331 = vrot.lane.b32.xlu0 %v443_v55, %s569_s29  ;;  %337 = vrot.lane.b32.xlu1 %v444_v56, %s570_s30 }
  0x72   :  { %343 = vrot.lane.b32.xlu0 %v445_v57, %s571_s6  ;;  %349 = vrot.lane.b32.xlu1 %v446_v58, %s572_s7 }
  0x74   :  { %v8_v61 = vpop.permute.xlu0 %7   ;;  %v20_v62 = vpop.permute.xlu1 %19  }
  0x75   :  { %10 = vst.msk [vmem:[#allocation0] sm:$0x1] %vm9_vm1, %v8_v61   ;;  %vm105_vm1 = vcmask 786160  }
  0x76   :  { %355 = vrot.lane.b32.xlu0 %v447_v59, %s573_s12  ;;  %361 = vrot.lane.b32.xlu1 %v448_v60, %s574_s13 }
  0x78   :  { %v14_v1 = vpop.permute.xlu0 %13   ;;  %v26_v2 = vpop.permute.xlu1 %25  }
  0x79   :  { %16 = vst.msk [vmem:[#allocation0] sm:$0x1] %vm15_vm3, %v14_v1   ;;  %vm117_vm3 = vcmask 753360  }
  0x7a   :  { %22 = vst.msk [vmem:[#allocation0] sm:$0x1] %vm21_vm2, %v20_v62   ;;  %367 = vrot.lane.b32.xlu0 %v449_v63, %s575_s18  ;;  %373 = vrot.lane.b32.xlu1 %v450_v0, %s576_s19  ;;  %vm111_vm2 = vcmask 769760  }
  0x7b   :  { %28 = vst.msk [vmem:[#allocation0] sm:$0x1] %vm27_vm4, %v26_v2   ;;  %vm123_vm4 = vcmask 736960  }
  0x7c   :  { %v32_v4 = vpop.permute.xlu0 %31   ;;  %v38_v5 = vpop.permute.xlu1 %37  }
  0x7d   :  { %34 = vst.msk [vmem:[#allocation0] sm:$0x1] %vm33_vm5, %v32_v4   ;;  %vm129_vm5 = vcmask 720560  }
  0x7e   :  { %379 = vrot.lane.b32.xlu0 %v451_v3, %s577_s0  ;;  %40 = vst.msk [vmem:[#allocation0] sm:$0x1] %vm39_vm6, %v38_v5   ;;  %vm135_vm6 = vcmask 704160  }
  0x80   :  { %v44_v6 = vpop.permute.xlu0 %43   ;;  %v50_v7 = vpop.permute.xlu1 %49  }
  0x81   :  { %46 = vst.msk [vmem:[#allocation0] sm:$0x1] %vm45_vm7, %v44_v6   ;;  %vm141_vm7 = vcmask 687760  }
  0x82   :  { %52 = vst.msk [vmem:[#allocation0] sm:$0x1] %vm51_vm8, %v50_v7   ;;  %vm147_vm8 = vcmask 671360  }
  0x84   :  { %v56_v8 = vpop.permute.xlu0 %55   ;;  %v62_v9 = vpop.permute.xlu1 %61  }
  0x85   :  { %58 = vst.msk [vmem:[#allocation0] sm:$0x1] %vm57_vm9, %v56_v8   ;;  %vm153_vm9 = vcmask 654960  }
  0x86   :  { %64 = vst.msk [vmem:[#allocation0] sm:$0x1] %vm63_vm10, %v62_v9   ;;  %vm159_vm10 = vcmask 638560  }
  0x88   :  { %v68_v10 = vpop.permute.xlu0 %67   ;;  %v74_v11 = vpop.permute.xlu1 %73  }
  0x89   :  { %70 = vst.msk [vmem:[#allocation0] sm:$0x1] %vm69_vm11, %v68_v10   ;;  %vm165_vm11 = vcmask 622160  }
  0x8a   :  { %76 = vst.msk [vmem:[#allocation0] sm:$0x1] %vm75_vm12, %v74_v11   ;;  %vm171_vm12 = vcmask 605760  }
  0x8c   :  { %v80_v12 = vpop.permute.xlu0 %79   ;;  %v86_v13 = vpop.permute.xlu1 %85  }
  0x8d   :  { %82 = vst.msk [vmem:[#allocation0] sm:$0x1] %vm81_vm13, %v80_v12   ;;  %vm177_vm13 = vcmask 589360  }
  0x8e   :  { %88 = vst.msk [vmem:[#allocation0] sm:$0x1] %vm87_vm14, %v86_v13   ;;  %vm183_vm14 = vcmask 572960  }
  0x90   :  { %v92_v14 = vpop.permute.xlu0 %91   ;;  %v98_v15 = vpop.permute.xlu1 %97  }
  0x91   :  { %94 = vst.msk [vmem:[#allocation0] sm:$0x1] %vm93_vm15, %v92_v14   ;;  %vm189_vm15 = vcmask 556560  }
  0x92   :  { %100 = vst.msk [vmem:[#allocation0] sm:$0x1] %vm99_vm0, %v98_v15   ;;  %vm195_vm0 = vcmask 540160  }
  0x94   :  { %v104_v16 = vpop.permute.xlu0 %103   ;;  %v110_v17 = vpop.permute.xlu1 %109  }
  0x95   :  { %106 = vst.msk [vmem:[#allocation0] sm:$0x1] %vm105_vm1, %v104_v16   ;;  %vm201_vm1 = vcmask 523760  }
  0x96   :  { %112 = vst.msk [vmem:[#allocation0] sm:$0x1] %vm111_vm2, %v110_v17   ;;  %vm207_vm2 = vcmask 507360  }
  0x98   :  { %v116_v18 = vpop.permute.xlu0 %115   ;;  %v122_v19 = vpop.permute.xlu1 %121  }
  0x99   :  { %118 = vst.msk [vmem:[#allocation0] sm:$0x1] %vm117_vm3, %v116_v18   ;;  %vm213_vm3 = vcmask 490960  }
  0x9a   :  { %124 = vst.msk [vmem:[#allocation0] sm:$0x1] %vm123_vm4, %v122_v19   ;;  %vm219_vm4 = vcmask 474560  }
  0x9c   :  { %v128_v20 = vpop.permute.xlu0 %127   ;;  %v134_v21 = vpop.permute.xlu1 %133  }
  0x9d   :  { %130 = vst.msk [vmem:[#allocation0] sm:$0x1] %vm129_vm5, %v128_v20   ;;  %vm225_vm5 = vcmask 458160  }
  0x9e   :  { %136 = vst.msk [vmem:[#allocation0] sm:$0x1] %vm135_vm6, %v134_v21   ;;  %vm231_vm6 = vcmask 441760  }
  0xa0   :  { %v140_v22 = vpop.permute.xlu0 %139   ;;  %v146_v23 = vpop.permute.xlu1 %145  }
  0xa1   :  { %142 = vst.msk [vmem:[#allocation0] sm:$0x1] %vm141_vm7, %v140_v22   ;;  %vm237_vm7 = vcmask 425360  }
  0xa2   :  { %148 = vst.msk [vmem:[#allocation0] sm:$0x1] %vm147_vm8, %v146_v23   ;;  %vm243_vm8 = vcmask 408960  }
  0xa4   :  { %v152_v24 = vpop.permute.xlu0 %151   ;;  %v158_v25 = vpop.permute.xlu1 %157  }
  0xa5   :  { %154 = vst.msk [vmem:[#allocation0] sm:$0x1] %vm153_vm9, %v152_v24   ;;  %vm249_vm9 = vcmask 392560  }
  0xa6   :  { %160 = vst.msk [vmem:[#allocation0] sm:$0x1] %vm159_vm10, %v158_v25   ;;  %vm255_vm10 = vcmask 376160  }
  0xa8   :  { %v164_v26 = vpop.permute.xlu0 %163   ;;  %v170_v27 = vpop.permute.xlu1 %169  }
  0xa9   :  { %166 = vst.msk [vmem:[#allocation0] sm:$0x1] %vm165_vm11, %v164_v26   ;;  %vm261_vm11 = vcmask 359760  }
  0xaa   :  { %172 = vst.msk [vmem:[#allocation0] sm:$0x1] %vm171_vm12, %v170_v27   ;;  %vm267_vm12 = vcmask 343360  }
  0xac   :  { %v176_v28 = vpop.permute.xlu0 %175   ;;  %v182_v29 = vpop.permute.xlu1 %181  }
  0xad   :  { %178 = vst.msk [vmem:[#allocation0] sm:$0x1] %vm177_vm13, %v176_v28   ;;  %vm273_vm13 = vcmask 326960  }
  0xae   :  { %184 = vst.msk [vmem:[#allocation0] sm:$0x1] %vm183_vm14, %v182_v29   ;;  %vm279_vm14 = vcmask 310560  }
  0xb0   :  { %v188_v30 = vpop.permute.xlu0 %187   ;;  %v194_v31 = vpop.permute.xlu1 %193  }
  0xb1   :  { %190 = vst.msk [vmem:[#allocation0] sm:$0x1] %vm189_vm15, %v188_v30   ;;  %vm285_vm15 = vcmask 294160  }
  0xb2   :  { %196 = vst.msk [vmem:[#allocation0] sm:$0x1] %vm195_vm0, %v194_v31   ;;  %vm291_vm0 = vcmask 277760  }
  0xb4   :  { %v200_v32 = vpop.permute.xlu0 %199   ;;  %v206_v33 = vpop.permute.xlu1 %205  }
  0xb5   :  { %202 = vst.msk [vmem:[#allocation0] sm:$0x1] %vm201_vm1, %v200_v32   ;;  %vm297_vm1 = vcmask 261360  }
  0xb6   :  { %208 = vst.msk [vmem:[#allocation0] sm:$0x1] %vm207_vm2, %v206_v33   ;;  %vm303_vm2 = vcmask 244960  }
  0xb8   :  { %v212_v34 = vpop.permute.xlu0 %211   ;;  %v218_v35 = vpop.permute.xlu1 %217  }
  0xb9   :  { %214 = vst.msk [vmem:[#allocation0] sm:$0x1] %vm213_vm3, %v212_v34   ;;  %vm309_vm3 = vcmask 228560  }
  0xba   :  { %220 = vst.msk [vmem:[#allocation0] sm:$0x1] %vm219_vm4, %v218_v35   ;;  %vm315_vm4 = vcmask 212160  }
  0xbc   :  { %v224_v36 = vpop.permute.xlu0 %223   ;;  %v230_v37 = vpop.permute.xlu1 %229  }
  0xbd   :  { %226 = vst.msk [vmem:[#allocation0] sm:$0x1] %vm225_vm5, %v224_v36   ;;  %vm321_vm5 = vcmask 195760  }
  0xbe   :  { %232 = vst.msk [vmem:[#allocation0] sm:$0x1] %vm231_vm6, %v230_v37   ;;  %vm327_vm6 = vcmask 179360  }
  0xc0   :  { %v236_v38 = vpop.permute.xlu0 %235   ;;  %v242_v39 = vpop.permute.xlu1 %241  }
  0xc1   :  { %238 = vst.msk [vmem:[#allocation0] sm:$0x1] %vm237_vm7, %v236_v38   ;;  %vm333_vm7 = vcmask 162960  }
  0xc2   :  { %244 = vst.msk [vmem:[#allocation0] sm:$0x1] %vm243_vm8, %v242_v39   ;;  %vm339_vm8 = vcmask 146560  }
  0xc4   :  { %v248_v40 = vpop.permute.xlu0 %247   ;;  %v254_v41 = vpop.permute.xlu1 %253  }
  0xc5   :  { %250 = vst.msk [vmem:[#allocation0] sm:$0x1] %vm249_vm9, %v248_v40   ;;  %vm345_vm9 = vcmask 130160  }
  0xc6   :  { %256 = vst.msk [vmem:[#allocation0] sm:$0x1] %vm255_vm10, %v254_v41   ;;  %vm351_vm10 = vcmask 113760  }
  0xc8   :  { %v260_v42 = vpop.permute.xlu0 %259   ;;  %v266_v43 = vpop.permute.xlu1 %265  }
  0xc9   :  { %262 = vst.msk [vmem:[#allocation0] sm:$0x1] %vm261_vm11, %v260_v42   ;;  %vm357_vm11 = vcmask 97360  }
  0xca   :  { %268 = vst.msk [vmem:[#allocation0] sm:$0x1] %vm267_vm12, %v266_v43   ;;  %vm363_vm12 = vcmask 80960  }
  0xcc   :  { %v272_v44 = vpop.permute.xlu0 %271   ;;  %v278_v45 = vpop.permute.xlu1 %277  }
  0xcd   :  { %274 = vst.msk [vmem:[#allocation0] sm:$0x1] %vm273_vm13, %v272_v44   ;;  %vm369_vm13 = vcmask 64560  }
  0xce   :  { %280 = vst.msk [vmem:[#allocation0] sm:$0x1] %vm279_vm14, %v278_v45   ;;  %vm375_vm14 = vcmask 48160  }
  0xd0   :  { %v284_v46 = vpop.permute.xlu0 %283   ;;  %v290_v47 = vpop.permute.xlu1 %289  }
  0xd1   :  { %286 = vst.msk [vmem:[#allocation0] sm:$0x1] %vm285_vm15, %v284_v46   ;;  %vm381_vm15 = vcmask 31760  }
  0xd2   :  { %292 = vst.msk [vmem:[#allocation0] sm:$0x1] %vm291_vm0, %v290_v47  }
  0xd4   :  { %v296_v48 = vpop.permute.xlu0 %295   ;;  %v302_v49 = vpop.permute.xlu1 %301  }
  0xd5   :  { %298 = vst.msk [vmem:[#allocation0] sm:$0x1] %vm297_vm1, %v296_v48  }
  0xd6   :  { %304 = vst.msk [vmem:[#allocation0] sm:$0x1] %vm303_vm2, %v302_v49  }
  0xd8   :  { %v308_v50 = vpop.permute.xlu0 %307   ;;  %v314_v51 = vpop.permute.xlu1 %313  }
  0xd9   :  { %310 = vst.msk [vmem:[#allocation0] sm:$0x1] %vm309_vm3, %v308_v50  }
  0xda   :  { %316 = vst.msk [vmem:[#allocation0] sm:$0x1] %vm315_vm4, %v314_v51  }
  0xdc   :  { %v320_v52 = vpop.permute.xlu0 %319   ;;  %v326_v53 = vpop.permute.xlu1 %325  }
  0xdd   :  { %322 = vst.msk [vmem:[#allocation0] sm:$0x1] %vm321_vm5, %v320_v52  }
  0xde   :  { %328 = vst.msk [vmem:[#allocation0] sm:$0x1] %vm327_vm6, %v326_v53  }
  0xe0   :  { %v332_v54 = vpop.permute.xlu0 %331   ;;  %v338_v55 = vpop.permute.xlu1 %337  }
  0xe1   :  { %334 = vst.msk [vmem:[#allocation0] sm:$0x1] %vm333_vm7, %v332_v54  }
  0xe2   :  { %340 = vst.msk [vmem:[#allocation0] sm:$0x1] %vm339_vm8, %v338_v55  }
  0xe4   :  { %v344_v56 = vpop.permute.xlu0 %343   ;;  %v350_v57 = vpop.permute.xlu1 %349  }
  0xe5   :  { %346 = vst.msk [vmem:[#allocation0] sm:$0x1] %vm345_vm9, %v344_v56  }
  0xe6   :  { %352 = vst.msk [vmem:[#allocation0] sm:$0x1] %vm351_vm10, %v350_v57  }
  0xe8   :  { %v356_v58 = vpop.permute.xlu0 %355   ;;  %v362_v59 = vpop.permute.xlu1 %361  }
  0xe9   :  { %358 = vst.msk [vmem:[#allocation0] sm:$0x1] %vm357_vm11, %v356_v58  }
  0xea   :  { %364 = vst.msk [vmem:[#allocation0] sm:$0x1] %vm363_vm12, %v362_v59  }
  0xec   :  { %v368_v60 = vpop.permute.xlu0 %367   ;;  %v374_v61 = vpop.permute.xlu1 %373  }
  0xed   :  { %370 = vst.msk [vmem:[#allocation0] sm:$0x1] %vm369_vm13, %v368_v60  }
  0xee   :  { %376 = vst.msk [vmem:[#allocation0] sm:$0x1] %vm375_vm14, %v374_v61  }
  0xf0   :  { %v380_v62 = vpop.permute.xlu0 %379  }
  0xf1   :  { %382 = vst.msk [vmem:[#allocation0] sm:$0x1] %vm381_vm15, %v380_v62  }
  0xf8   :  { %v386_v63 = vld [vmem:[#allocation0] sm:$0x1] }
  0xf9   :  { %388 = vst [vmem:[%s784_s1] sm:$0x1] %v386_v63 }

// kernel: mlp_forward.1
= control target key start
LH: loop header
LB: loop body
LE: loop exit
PB: predicated region body
PF: predicated region fallthrough
CT: control target
= control target key end

     0   :  { %v1154_v0 = vmov 0.0|0.0   ;;  %vm1155_vm0 = vmmov 0   ;;  %v1156_v8 = vmov 0.0   ;;  %s1481_s0 = inlined_call_operand.vmem [shape: f32[128,128], index: 0, kind: input, shape index: {}]   ;;  %s1482_s2 = inlined_call_operand.vmem [shape: f32[8,128], index: 2, kind: input, shape index: {}]   ;;  %s1483_s1 = inlined_call_operand.vmem [shape: f32[1,128], index: 1, kind: input, shape index: {}]   ;;  %s1484_s3 = inlined_call_operand.vmem [shape: f32[8,128], index: 3, kind: output, shape index: {}]  }
   0x1   :  { %997 = vmatprep.subr.bf16.mxu1 %v1154_v0  ;;  %1069 = vmatprep.subr.bf16.mxu0 %v1154_v0  ;;  %v15_v1 = vld [vmem:[%s1481_s0] sm:$0xff]  ;;  %v16_v2 = vld [vmem:[%s1481_s0 + $0x8] sm:$0xff]  ;;  %v17_v3 = vld [vmem:[%s1481_s0 + $0x10] sm:$0xff] }
   0x2   :  { %v39_v4 = vand.u32 4294901760, %v15_v1  ;;  %v42_v5 = vand.u32 4294901760, %v16_v2  ;;  %v18_v6 = vld [vmem:[%s1481_s0 + $0x18] sm:$0xff]  ;;  %v45_v7 = vand.u32 4294901760, %v17_v3  ;;  %819 = vmatprep.mubr.msk.f32.mxu1 %vm1155_vm0, %v1156_v8  ;;  %924 = vmatprep.mubr.msk.f32.mxu0 %vm1155_vm0, %v1156_v8  ;;  %v19_v10 = vld [vmem:[%s1481_s0 + $0x20] sm:$0xff]  ;;  %v20_v11 = vld [vmem:[%s1481_s0 + $0x28] sm:$0xff] }
   0x3   :  { %v48_v9 = vand.u32 4294901760, %v18_v6  ;;  %v51_v14 = vand.u32 4294901760, %v19_v10  ;;  %v54_v15 = vand.u32 4294901760, %v20_v11  ;;  %v21_v16 = vld [vmem:[%s1481_s0 + $0x30] sm:$0xff]  ;;  %v22_v17 = vld [vmem:[%s1481_s0 + $0x38] sm:$0xff]  ;;  %v1224_v21 = vld [vmem:[%s1481_s0 + $0x40] sm:$0xff] }
   0x4   :  { %v1201_v12 = vpack.c.bf16 %v42_v5, %v39_v4  ;;  %v57_v19 = vand.u32 4294901760, %v21_v16  ;;  %v60_v20 = vand.u32 4294901760, %v22_v17  ;;  %v1229_v22 = vld [vmem:[%s1481_s0 + $0x48] sm:$0xff]  ;;  %v63_v24 = vand.u32 4294901760, %v1224_v21  ;;  %v14_v26 = vld [vmem:[%s1482_s2] sm:$0xff]  ;;  %v1245_v27 = vld [vmem:[%s1481_s0 + $0x50] sm:$0xff] }
   0x5   :  { %v1205_v13 = vpack.c.bf16 %v48_v9, %v45_v7  ;;  %v1217_v18 = vpack.c.bf16 %v54_v15, %v51_v14  ;;  %v66_v25 = vand.u32 4294901760, %v1229_v22  ;;  %v1250_v28 = vld [vmem:[%s1481_s0 + $0x58] sm:$0xff]  ;;  %v1252_v29 = vsub.f32 %v15_v1, %v39_v4  ;;  %v1267_v35 = vld [vmem:[%s1481_s0 + $0x60] sm:$0xff]  ;;  %v1274_v36 = vld [vmem:[%s1481_s0 + $0x68] sm:$0xff] }
   0x6   :  { %999 = vmatpush3.bf16.msra.mxu1 %v1201_v12  ;;  %1071 = vmatpush3.bf16.msra.mxu0 %v1201_v12  ;;  %v1233_v23 = vpack.c.bf16 %v60_v20, %v57_v19  ;;  %v1254_v30 = vand.u32 4294901760, %v14_v26  ;;  %v1256_v31 = vsub.f32 %v16_v2, %v42_v5  ;;  %v69_v33 = vand.u32 4294901760, %v1245_v27  ;;  %v1296_v43 = vld [vmem:[%s1481_s0 + $0x70] sm:$0xff]  ;;  %v1301_v44 = vld [vmem:[%s1481_s0 + $0x78] sm:$0xff] }
   0x7   :  { %1000 = vmatprep.subr.bf16.mxu1 %v1154_v0  ;;  %1072 = vmatprep.subr.bf16.mxu0 %v1154_v0  ;;  %v1260_v32 = vpack.c.bf16 %v66_v25, %v63_v24  ;;  %v72_v34 = vand.u32 4294901760, %v1250_v28  ;;  %v1276_v37 = vsub.f32 %v17_v3, %v45_v7  ;;  %v1278_v38 = vsub.f32 %v18_v6, %v48_v9 }
   0x8   :  { %v75_v39 = vand.u32 4294901760, %v1267_v35  ;;  %v1282_v40 = vsub.f32 %v14_v26, %v1254_v30  ;;  %v78_v42 = vand.u32 4294901760, %v1274_v36  ;;  %v132_v45 = vand.u32 4294901760, %v1252_v29 }
   0x9   :  { %v1290_v41 = vpack.c.bf16 %v72_v34, %v69_v33  ;;  %v139_v46 = vand.u32 4294901760, %v1256_v31  ;;  %v1307_v47 = vsub.f32 %v19_v10, %v51_v14  ;;  %v1309_v48 = vsub.f32 %v20_v11, %v54_v15 }
   0xa   :  { %1002 = vmatpush3.bf16.msra.mxu1 %v1205_v13  ;;  %1074 = vmatpush3.bf16.msra.mxu0 %v1205_v13  ;;  %v81_v49 = vand.u32 4294901760, %v1296_v43  ;;  %v84_v50 = vand.u32 4294901760, %v1301_v44  ;;  %v121_v51 = vand.u32 4294901760, %v1282_v40  ;;  %v146_v52 = vand.u32 4294901760, %v1276_v37 }
   0xb   :  { %1003 = vmatprep.subr.bf16.mxu1 %v1154_v0  ;;  %1075 = vmatprep.subr.bf16.mxu0 %v1154_v0  ;;  %v1321_v53 = vpack.c.bf16 %v78_v42, %v75_v39  ;;  %v133_v54 = vsub.f32 %v1252_v29, %v132_v45  ;;  %v140_v55 = vsub.f32 %v1256_v31, %v139_v46  ;;  %v153_v56 = vand.u32 4294901760, %v1278_v38 }
   0xc   :  { %v1328_v57 = vsub.f32 %v21_v16, %v57_v19  ;;  %v1330_v58 = vsub.f32 %v22_v17, %v60_v20  ;;  %v122_v59 = vsub.f32 %v1282_v40, %v121_v51  ;;  %v147_v60 = vsub.f32 %v1276_v37, %v146_v52 }
   0xd   :  { %v160_v61 = vand.u32 4294901760, %v1307_v47  ;;  %v167_v62 = vand.u32 4294901760, %v1309_v48  ;;  %v1342_v63 = vpack.c.bf16 %v84_v50, %v81_v49  ;;  %v134_v1 = vand.u32 4294901760, %v133_v54 }
   0xe   :  { %1005 = vmatpush3.bf16.msra.mxu1 %v1217_v18  ;;  %1077 = vmatpush3.bf16.msra.mxu0 %v1217_v18  ;;  %v141_v2 = vand.u32 4294901760, %v140_v55  ;;  %v154_v3 = vsub.f32 %v1278_v38, %v153_v56  ;;  %v1348_v4 = vsub.f32 %v1224_v21, %v63_v24  ;;  %v1351_v5 = vsub.f32 %v1229_v22, %v66_v25 }
   0xf   :  { %1006 = vmatprep.subr.bf16.mxu1 %v1154_v0  ;;  %1078 = vmatprep.subr.bf16.mxu0 %v1154_v0  ;;  %v1094_v6 = vpack.c.bf16 %v139_v46, %v132_v45  ;;  %v123_v7 = vand.u32 4294901760, %v122_v59  ;;  %v148_v9 = vand.u32 4294901760, %v147_v60  ;;  %v161_v10 = vsub.f32 %v1307_v47, %v160_v61 }
  0x10   :  { %v168_v11 = vsub.f32 %v1309_v48, %v167_v62  ;;  %v1022_v14 = vpack.c.bf16 %v141_v2, %v134_v1  ;;  %v155_v15 = vand.u32 4294901760, %v154_v3  ;;  %v174_v16 = vand.u32 4294901760, %v1328_v57 }
  0x11   :  { %v181_v17 = vand.u32 4294901760, %v1330_v58  ;;  %v1364_v19 = vsub.f32 %v1245_v27, %v69_v33  ;;  %v1369_v20 = vsub.f32 %v1250_v28, %v72_v34  ;;  %v1097_v21 = vpack.c.bf16 %v153_v56, %v146_v52 }
  0x12   :  { %1008 = vmatpush3.bf16.msra.mxu1 %v1233_v23  ;;  %1080 = vmatpush3.bf16.msra.mxu0 %v1233_v23  ;;  %v162_v22 = vand.u32 4294901760, %v161_v10  ;;  %v169_v24 = vand.u32 4294901760, %v168_v11  ;;  %v188_v25 = vand.u32 4294901760, %v1348_v4  ;;  %v1025_v26 = vpack.c.bf16 %v155_v15, %v148_v9 }
  0x13   :  { %1009 = vmatprep.subr.bf16.mxu1 %v1154_v0  ;;  %1081 = vmatprep.subr.bf16.mxu0 %v1154_v0  ;;  %v175_v45 = vsub.f32 %v1328_v57, %v174_v16  ;;  %v182_v27 = vsub.f32 %v1330_v58, %v181_v17  ;;  %v195_v33 = vand.u32 4294901760, %v1351_v5  ;;  %v1380_v28 = vsub.f32 %v1267_v35, %v75_v39 }
  0x14   :  { %v1385_v34 = vsub.f32 %v1274_v36, %v78_v42  ;;  %v1028_v46 = vpack.c.bf16 %v169_v24, %v162_v22  ;;  %v189_v52 = vsub.f32 %v1348_v4, %v188_v25  ;;  %v202_v54 = vand.u32 4294901760, %v1364_v19 }
  0x15   :  { %v176_v35 = vand.u32 4294901760, %v175_v45  ;;  %v183_v39 = vand.u32 4294901760, %v182_v27  ;;  %v196_v55 = vsub.f32 %v1351_v5, %v195_v33  ;;  %v209_v36 = vand.u32 4294901760, %v1369_v20 }
  0x16   :  { %1011 = vmatpush3.bf16.msra.mxu1 %v1260_v32  ;;  %1083 = vmatpush3.bf16.msra.mxu0 %v1260_v32  ;;  %v1400_v42 = vsub.f32 %v1296_v43, %v81_v49  ;;  %v1405_v56 = vsub.f32 %v1301_v44, %v84_v50  ;;  %v1103_v59 = vpack.c.bf16 %v181_v17, %v174_v16  ;;  %v190_v60 = vand.u32 4294901760, %v189_v52 }
  0x17   :  { %1012 = vmatprep.subr.bf16.mxu1 %v1154_v0  ;;  %1084 = vmatprep.subr.bf16.mxu0 %v1154_v0  ;;  %v1031_v1 = vpack.c.bf16 %v183_v39, %v176_v35  ;;  %v197_v2 = vand.u32 4294901760, %v196_v55  ;;  %v210_v3 = vsub.f32 %v1369_v20, %v209_v36  ;;  %v223_v43 = vand.u32 4294901760, %v1385_v34 }
  0x18   :  { %v1106_v44 = vpack.c.bf16 %v195_v33, %v188_v25  ;;  %v237_v11 = vand.u32 4294901760, %v1405_v56 }
  0x19   :  { %v211_v9 = vand.u32 4294901760, %v210_v3  ;;  %v224_v10 = vsub.f32 %v1385_v34, %v223_v43 }
  0x1a   :  { %1014 = vmatpush3.bf16.msra.mxu1 %v1290_v41  ;;  %1086 = vmatpush3.bf16.msra.mxu0 %v1290_v41  ;;  %v238_v22 = vsub.f32 %v1405_v56, %v237_v11 }
  0x1b   :  { %1015 = vmatprep.subr.bf16.mxu1 %v1154_v0  ;;  %1087 = vmatprep.subr.bf16.mxu0 %v1154_v0  ;;  %v225_v17 = vand.u32 4294901760, %v224_v10 }
  0x1c   :  { %v239_v45 = vand.u32 4294901760, %v238_v22 }
  0x1e   :  { %1017 = vmatpush3.bf16.msra.mxu1 %v1321_v53  ;;  %1089 = vmatpush3.bf16.msra.mxu0 %v1321_v53 }
  0x1f   :  { %1018 = vmatprep.subr.bf16.mxu1 %v1154_v0  ;;  %1090 = vmatprep.subr.bf16.mxu0 %v1154_v0 }
  0x22   :  { %1020 = vmatpush3.bf16.msra.mxu1 %v1342_v63  ;;  %1092 = vmatpush3.bf16.msra.mxu0 %v1342_v63 }
  0x23   :  { %1021 = vmatprep.subr.bf16.mxu1 %v1154_v0  ;;  %1093 = vmatprep.subr.bf16.mxu0 %v1154_v0 }
  0x25   :  { %820 = vmatmul.mubr.f32.vlgmr.msra.gmra.mrb[0].mxu1 %v123_v7  ;;  %925 = vmatmul.mubr.f32.vlgmr.msra.gmra.mrb[0].mxu0 %v121_v51  ;;  %v1100_v51 = vpack.c.bf16 %v167_v62, %v160_v61  ;;  %v203_v61 = vsub.f32 %v1364_v19, %v202_v54  ;;  %v216_v62 = vand.u32 4294901760, %v1380_v28  ;;  %v1034_v7 = vpack.c.bf16 %v197_v2, %v190_v60 }
  0x26   :  { %1023 = vmatpush3.bf16.msra.mxu1 %v1022_v14  ;;  %1095 = vmatpush3.bf16.msra.mxu0 %v1094_v6  ;;  %v230_v6 = vand.u32 4294901760, %v1400_v42  ;;  %v1109_v14 = vpack.c.bf16 %v209_v36, %v202_v54 }
  0x27   :  { %1024 = vmatprep.subr.bf16.mxu1 %v1154_v0  ;;  %1096 = vmatprep.subr.bf16.mxu0 %v1154_v0  ;;  %v204_v49 = vand.u32 4294901760, %v203_v61  ;;  %v217_v50 = vsub.f32 %v1380_v28, %v216_v62  ;;  %v1112_v25 = vpack.c.bf16 %v223_v43, %v216_v62 }
  0x28   :  { %854 = vmatprep.mubr.msk.f32.mxu1 %vm1155_vm0, %v1156_v8  ;;  %959 = vmatprep.mubr.msk.f32.mxu0 %vm1155_vm0, %v1156_v8  ;;  %v1115_v33 = vpack.c.bf16 %v237_v11, %v230_v6 }
  0x29   :  { %v218_v15 = vand.u32 4294901760, %v217_v50  ;;  %v1037_v16 = vpack.c.bf16 %v211_v9, %v204_v49 }
  0x2a   :  { %1026 = vmatpush3.bf16.msra.mxu1 %v1025_v26  ;;  %1098 = vmatpush3.bf16.msra.mxu0 %v1097_v21  ;;  %v231_v21 = vsub.f32 %v1400_v42, %v230_v6 }
  0x2b   :  { %1027 = vmatprep.subr.bf16.mxu1 %v1154_v0  ;;  %1099 = vmatprep.subr.bf16.mxu0 %v1154_v0  ;;  %v1040_v24 = vpack.c.bf16 %v225_v17, %v218_v15 }
  0x2c   :  { %v232_v26 = vand.u32 4294901760, %v231_v21 }
  0x2e   :  { %1029 = vmatpush3.bf16.msra.mxu1 %v1028_v46  ;;  %1101 = vmatpush3.bf16.msra.mxu0 %v1100_v51  ;;  %v1043_v27 = vpack.c.bf16 %v239_v45, %v232_v26  ;;  %v1046_v46 = vpack.c.bf16 %v1256_v31, %v1252_v29  ;;  %v1049_v51 = vpack.c.bf16 %v1278_v38, %v1276_v37  ;;  %v684_v31 = vld [vmem:[%s1483_s1] ss:$0 sm:$0xff] }
  0x2f   :  { %1030 = vmatprep.subr.bf16.mxu1 %v1154_v0  ;;  %1102 = vmatprep.subr.bf16.mxu0 %v1154_v0  ;;  %v1052_v29 = vpack.c.bf16 %v1309_v48, %v1307_v47 }
  0x32   :  { %1032 = vmatpush3.bf16.msra.mxu1 %v1031_v1  ;;  %1104 = vmatpush3.bf16.msra.mxu0 %v1103_v59 }
  0x33   :  { %1033 = vmatprep.subr.bf16.mxu1 %v1154_v0  ;;  %1105 = vmatprep.subr.bf16.mxu0 %v1154_v0 }
  0x36   :  { %1035 = vmatpush3.bf16.msra.mxu1 %v1034_v7  ;;  %1107 = vmatpush3.bf16.msra.mxu0 %v1106_v44 }
  0x37   :  { %1036 = vmatprep.subr.bf16.mxu1 %v1154_v0  ;;  %1108 = vmatprep.subr.bf16.mxu0 %v1154_v0 }
  0x3a   :  { %1038 = vmatpush3.bf16.msra.mxu1 %v1037_v16  ;;  %1110 = vmatpush3.bf16.msra.mxu0 %v1109_v14 }
  0x3b   :  { %1039 = vmatprep.subr.bf16.mxu1 %v1154_v0  ;;  %1111 = vmatprep.subr.bf16.mxu0 %v1154_v0 }
  0x3e   :  { %1041 = vmatpush3.bf16.msra.mxu1 %v1040_v24  ;;  %1113 = vmatpush3.bf16.msra.mxu0 %v1112_v25 }
  0x3f   :  { %1042 = vmatprep.subr.bf16.mxu1 %v1154_v0  ;;  %1114 = vmatprep.subr.bf16.mxu0 %v1154_v0 }
  0x42   :  { %1044 = vmatpush3.bf16.msra.mxu1 %v1043_v27  ;;  %1116 = vmatpush3.bf16.msra.mxu0 %v1115_v33 }
  0x43   :  { %1045 = vmatprep.subr.bf16.mxu1 %v1154_v0  ;;  %1117 = vmatprep.subr.bf16.mxu0 %v1154_v0 }
  0x45   :  { %855 = vmatmul.mubr.f32.vlgmr.msra.gmra.mrb[0].mxu1 %v1254_v30  ;;  %960 = vmatmul.mubr.f32.vlgmr.msra.gmra.mrb[0].mxu0 %v1254_v30 }
  0x46   :  { %1047 = vmatpush3.bf16.msra.mxu1 %v1046_v46  ;;  %1119 = vmatpush3.bf16.msra.mxu0 %v1201_v12  ;;  %v1055_v12 = vpack.c.bf16 %v1330_v58, %v1328_v57 }
  0x47   :  { %1048 = vmatprep.subr.bf16.mxu1 %v1154_v0  ;;  %1120 = vmatprep.subr.bf16.mxu0 %v1154_v0 }
  0x48   :  { %889 = vmatprep.mubr.msk.f32.mxu1 %vm1155_vm0, %v1156_v8  ;;  %994 = vmatprep.mubr.msk.f32.mxu0 %vm1155_vm0, %v1156_v8  ;;  %v1058_v8 = vpack.c.bf16 %v1351_v5, %v1348_v4 }
  0x4a   :  { %1050 = vmatpush3.bf16.msra.mxu1 %v1049_v51  ;;  %1122 = vmatpush3.bf16.msra.mxu0 %v1205_v13  ;;  %v1061_v13 = vpack.c.bf16 %v1369_v20, %v1364_v19 }
  0x4b   :  { %1051 = vmatprep.subr.bf16.mxu1 %v1154_v0  ;;  %1123 = vmatprep.subr.bf16.mxu0 %v1154_v0 }
  0x4e   :  { %1053 = vmatpush3.bf16.msra.mxu1 %v1052_v29  ;;  %1125 = vmatpush3.bf16.msra.mxu0 %v1217_v18  ;;  %v1064_v18 = vpack.c.bf16 %v1385_v34, %v1380_v28 }
  0x4f   :  { %1054 = vmatprep.subr.bf16.mxu1 %v1154_v0  ;;  %1126 = vmatprep.subr.bf16.mxu0 %v1154_v0 }
  0x52   :  { %1056 = vmatpush3.bf16.msra.mxu1 %v1055_v12  ;;  %1128 = vmatpush3.bf16.msra.mxu0 %v1233_v23  ;;  %v1067_v23 = vpack.c.bf16 %v1405_v56, %v1400_v42 }
  0x53   :  { %1057 = vmatprep.subr.bf16.mxu1 %v1154_v0  ;;  %1129 = vmatprep.subr.bf16.mxu0 %v1154_v0 }
  0x56   :  { %1059 = vmatpush3.bf16.msra.mxu1 %v1058_v8  ;;  %1131 = vmatpush3.bf16.msra.mxu0 %v1260_v32 }
  0x57   :  { %1060 = vmatprep.subr.bf16.mxu1 %v1154_v0  ;;  %1132 = vmatprep.subr.bf16.mxu0 %v1154_v0 }
  0x5a   :  { %1062 = vmatpush3.bf16.msra.mxu1 %v1061_v13  ;;  %1134 = vmatpush3.bf16.msra.mxu0 %v1290_v41 }
  0x5b   :  { %1063 = vmatprep.subr.bf16.mxu1 %v1154_v0  ;;  %1135 = vmatprep.subr.bf16.mxu0 %v1154_v0 }
  0x5e   :  { %1065 = vmatpush3.bf16.msra.mxu1 %v1064_v18  ;;  %1137 = vmatpush3.bf16.msra.mxu0 %v1321_v53 }
  0x5f   :  { %1066 = vmatprep.subr.bf16.mxu1 %v1154_v0  ;;  %1138 = vmatprep.subr.bf16.mxu0 %v1154_v0 }
  0x62   :  { %1068 = vmatpush3.bf16.msra.mxu1 %v1067_v23  ;;  %1140 = vmatpush3.bf16.msra.mxu0 %v1342_v63 }
  0x65   :  { %890 = vmatmul.mubr.f32.vlgmr.msra.gmra.mrb[0].mxu1 %v1282_v40  ;;  %995 = vmatmul.mubr.f32.vlgmr.msra.gmra.mrb[0].mxu0 %v1254_v30 }
 0x138   :  { %v380_v32 = vpop.f32.mrb[0].mxu1  ;;  %v675_v37 = vpop.f32.mrb[0].mxu0 }
 0x139   :  { %v1141_v38 = vadd.f32 %v684_v31, %v380_v32  ;;  %v891_v41 = vpop.f32.mrb[1].mxu1  ;;  %v996_v47 = vpop.f32.mrb[1].mxu0 }
 0x13b   :  { %v1142_v48 = vadd.f32 %v1141_v38, %v675_v37 }
 0x13d   :  { %679 = vst [vmem:[%s1484_s3] sm:$0xff] %v1142_v48 }

</bundles_post_ra>
